<compile_context>
chip_gen: v7x
topology: tpu7x:2x2x1
jax: 0.10.0
libtpu: 0.0.40
codegen_flags: <defaults>
</compile_context>

<pallas_src>
import jax
import jax.numpy as jnp
import numpy as np
from jax.experimental import pallas as pl
from jax.experimental.pallas import tpu as pltpu

_LANES = 128


def _weighted_sum_kernel(w_ref, pred_ref, out_ref):
    """w_ref: (M,) f32 in SMEM; pred_ref: (M, tN) VMEM tile; out_ref: (1, tN) VMEM tile."""
    num_matrices = pred_ref.shape[0]
    # Unrolled over the (small, static) matrix axis with scalar weights:
    # one mul + one FMA per output element, no (M, tN) product temporary.
    acc = pred_ref[0:1, :].astype(jnp.float32) * w_ref[0]
    for m in range(1, num_matrices):
        acc = acc + pred_ref[m:m + 1, :].astype(jnp.float32) * w_ref[m]
    out_ref[...] = acc.astype(out_ref.dtype)


def probability_fusion_v3(pred, keys, query, *, block_rows=2048):
    """pred: (M, B, C); keys: (M, C); query: (C, 1). Returns ((B, C) f32, (M, 1) f32).

    block_rows = number of 128-lane rows streamed per grid step (2048 is a good
    default on v5e/v6e/v7x; ~4096 is fine on v6e, keep an eye on v7x's 64 MiB VMEM).
    """
    M, B, C = pred.shape
    assert keys.shape == (M, C) and query.shape == (C, 1)
    N = B * C

    # Tiny (M,C)@(C,1) attention + softmax: computed with plain jnp in the
    # wrapper (far too small for a kernel); weights go to the kernel via SMEM.
    scores = (keys.astype(jnp.float32) @ query.astype(jnp.float32)) / (C ** 0.5)  # (M, 1)
    attn_weights = jax.nn.softmax(scores, axis=0)                                 # (M, 1)
    w_flat = attn_weights.reshape(M)                                              # (M,)

    # Lane-dense tiling of the flattened batch*class axis.  No padding of pred:
    # the ragged last block is masked by Pallas on load and on store.
    block_rows = max(int(block_rows), 1)
    n_lane_aligned = pl.cdiv(N, _LANES) * _LANES
    tN = min(block_rows * _LANES, n_lane_aligned)
    num_steps = pl.cdiv(N, tN)

    pred2 = pred.reshape(M, N)   # free reshape (contiguous), dtype kept as-is

    cost = pl.CostEstimate(
        flops=2 * M * N,
        transcendentals=0,
        bytes_accessed=M * N * pred2.dtype.itemsize + N * 4 + M * 4,
    )

    out = pl.pallas_call(
        _weighted_sum_kernel,
        out_shape=jax.ShapeDtypeStruct((1, N), jnp.float32),
        grid=(num_steps,),
        in_specs=[
            pl.BlockSpec(memory_space=pltpu.MemorySpace.SMEM),   # weights (M,) in SMEM
            pl.BlockSpec((M, tN), lambda i: (0, i)),             # streamed pred tile
        ],
        out_specs=pl.BlockSpec((1, tN), lambda i: (0, i)),       # lane-dense output tile
        compiler_params=pltpu.CompilerParams(
            dimension_semantics=("parallel",),                   # megacore-shardable (v7x)
            vmem_limit_bytes=48 * 1024 * 1024,
        ),
        cost_estimate=cost,
    )(w_flat, pred2)

    weighted = out.reshape(B, C)
    return weighted, attn_weights


def _reference(pred, keys, query):
    C = keys.shape[1]
    scores = (keys @ query) / (C ** 0.5)            # (M, 1)
    w = jax.nn.softmax(scores, axis=0)              # (M, 1)
    weighted = jnp.sum(pred * w[:, :, None], axis=0)
    return weighted, w


if __name__ == "__main__":
    num_matrices = 2
    num_classes = 7

    key = jax.random.PRNGKey(0)
    k_q, k_k, k_p1, k_p2 = jax.random.split(key, 4)

    # Deterministic parameter init (nn.Parameter(torch.randn(...)) shapes).
    query = jax.random.normal(k_q, (num_classes, 1), dtype=jnp.float32)
    keys = jax.random.normal(k_k, (num_matrices, num_classes), dtype=jnp.float32)

    # Case 1: small batch; B*C = 700 is not lane-aligned -> single ragged block
    # exercises masked load + masked store without any wrapper-side padding.
    batch1 = 100
    pred1 = jax.nn.softmax(
        jax.random.normal(k_p1, (num_matrices, batch1, num_classes), jnp.float32),
        axis=-1,
    )
    wm1, w1 = probability_fusion_v3(pred1, keys, query)
    jax.block_until_ready((wm1, w1))
    wm1_ref, w1_ref = _reference(pred1, keys, query)
    np.testing.assert_allclose(np.asarray(wm1), np.asarray(wm1_ref), rtol=1e-5, atol=1e-5)
    np.testing.assert_allclose(np.asarray(w1), np.asarray(w1_ref), rtol=1e-5, atol=1e-5)

    # Case 2: larger batch with a tiny tile -> multi-step streamed grid + ragged tail.
    batch2 = 530
    pred2 = jax.nn.softmax(
        jax.random.normal(k_p2, (num_matrices, batch2, num_classes), jnp.float32),
        axis=-1,
    )
    wm2, w2 = probability_fusion_v3(pred2, keys, query, block_rows=2)
    jax.block_until_ready((wm2, w2))
    wm2_ref, w2_ref = _reference(pred2, keys, query)
    np.testing.assert_allclose(np.asarray(wm2), np.asarray(wm2_ref), rtol=1e-5, atol=1e-5)
    np.testing.assert_allclose(np.asarray(w2), np.asarray(w2_ref), rtol=1e-5, atol=1e-5)

    print("KERNEL_OK")
</pallas_src>

<mosaic_0001>
module attributes {stable_mosaic.version = 11 : i64} {
  func.func @_weighted_sum_kernel(%arg0: i32, %arg1: memref<2xf32, #tpu.memory_space<smem>>, %arg2: memref<2x768xf32, #tpu.memory_space<vmem>>, %arg3: memref<1x768xf32, #tpu.memory_space<vmem>>) attributes {dimension_semantics = [#tpu.dimension_semantics<parallel>], iteration_bounds = array<i64: 1>, scalar_prefetch = 0 : i64, scratch_operands = 0 : i64, tpu.core_type = #tpu.core_type<tc>, window_params = [{transform_indices = @transform_0, window_bounds = array<i64: 2>}, {transform_indices = @transform_1, window_bounds = array<i64: 2, 768>}, {transform_indices = @transform_2, window_bounds = array<i64: 1, 768>}]} {
    %c0 = arith.constant 0 : index
    %c0_0 = arith.constant 0 : index
    %0 = vector.load %arg2[%c0, %c0_0] : memref<2x768xf32, #tpu.memory_space<vmem>>, vector<1x768xf32>
    %c0_1 = arith.constant 0 : index
    %1 = memref.load %arg1[%c0_1] : memref<2xf32, #tpu.memory_space<smem>>
    %2 = vector.broadcast %1 : f32 to vector<1x768xf32>
    %3 = arith.mulf %0, %2 : vector<1x768xf32>
    %c1 = arith.constant 1 : index
    %c0_2 = arith.constant 0 : index
    %4 = vector.load %arg2[%c1, %c0_2] : memref<2x768xf32, #tpu.memory_space<vmem>>, vector<1x768xf32>
    %c1_3 = arith.constant 1 : index
    %5 = memref.load %arg1[%c1_3] : memref<2xf32, #tpu.memory_space<smem>>
    %6 = vector.broadcast %5 : f32 to vector<1x768xf32>
    %7 = arith.mulf %4, %6 : vector<1x768xf32>
    %8 = arith.addf %3, %7 : vector<1x768xf32>
    %c0_4 = arith.constant 0 : index
    %c0_5 = arith.constant 0 : index
    %9 = vector.load %arg3[%c0_4, %c0_5] : memref<1x768xf32, #tpu.memory_space<vmem>>, vector<1x768xf32>
    tpu.vector_store %arg3[%c0_4, %c0_5], %8 {strides = array<i32>} : memref<1x768xf32, #tpu.memory_space<vmem>>, vector<1x768xf32>,
    return
  }
  func.func @transform_0(%arg0: i32) -> i32 {
    %c0_i32 = arith.constant 0 : i32
    %c0_i32_0 = arith.constant 0 : i32
    return %c0_i32 : i32
  }
  func.func @transform_1(%arg0: i32) -> (i32, i32) {
    %c0_i32 = arith.constant 0 : i32
    %c0_i32_0 = arith.constant 0 : i32
    return %c0_i32, %arg0 : i32, i32
  }
  func.func @transform_2(%arg0: i32) -> (i32, i32) {
    %c0_i32 = arith.constant 0 : i32
    %c0_i32_0 = arith.constant 0 : i32
    return %c0_i32, %arg0 : i32, i32
  }
}

</mosaic_0001>

<bundles_post_ra>
// kernel: tpu_custom_call.1
= control target key start
LH: loop header
LB: loop body
LE: loop exit
PB: predicated region body
PF: predicated region fallthrough
CT: control target
= control target key end

     0   :  { %7 = vsyncpa [#allocation5], 0  ;;  %s184_s0 = inlined_call_operand.hbm [shape: f32[2], index: 0, kind: input, shape index: {}]   ;;  %s185_s1 = inlined_call_operand.hbm [shape: f32[2,700], index: 1, kind: input, shape index: {}]   ;;  %s186_s2 = inlined_call_operand.hbm [shape: f32[1,700], index: 2, kind: output, shape index: {}]  }
   0x1   :  { %8 = vsyncpa [#allocation3], 0 }
   0x2   :  { %9 = vsyncpa [#allocation4], 0  ;;  %s70_s11 = scalar_lea.hbm %s184_s0, 16 }
   0x3   :  { %p71_p0 = scmp.ne.s32.totalorder %s184_s0, %s70_s11  ;;  %p74_p1 = scmp.lt.u32.totalorder %s70_s11, %s184_s0 }
   0x5   :  { %p76_p2 = pnand %p74_p1, %p71_p0 }
   0x7   :  { %79 = shalt.err (!%p76_p2)
}
   0x8   :  { %s130_s16 = smov [#allocation2]   ;;  %s131_s19 = smov [#allocation6]  }
   0x9   :  { %17 = dma.hbm_to_smem %s184_s0, 16, %s130_s16, [#allocation5]  }
   0xa   :  { %s24_s20 = sshll.u32 %s131_s19, 4  ;;  %s80_s23 = scalar_lea.hbm %s185_s1, 192  ;;  %s25_s20 = int_to_ptr.vmem [resolvable:$true] %s24_s20 }
   0xb   :  { %p81_p3 = scmp.ne.s32.totalorder %s185_s1, %s80_s23  ;;  %p84_p4 = scmp.lt.u32.totalorder %s80_s23, %s185_s1 }
   0xd   :  { %p86_p5 = pnand %p84_p4, %p81_p3 }
   0xf   :  { %89 = shalt.err (!%p86_p5)
}
  0x10   :  { %s90_s28 = scalar_lea.vmem %s25_s20, 192  ;;  %p95_p7 = scmp.lt.s32.totalorder %s25_s20, %s25_s20 }
  0x11   :  { %p91_p6 = scmp.ne.s32.totalorder %s25_s20, %s90_s28  ;;  %p96_p8 = scmp.lt.s32.totalorder %s90_s28, %s90_s28 }
  0x13   :  { %p97_p9 = por %p96_p8, %p95_p7 }
  0x15   :  { %p98_p10 = pnand %p97_p9, %p91_p6 }
  0x17   :  { %101 = shalt.err (!%p98_p10)
}
  0x18   :  { %27 = dma.hbm_to_vmem [thread:$0]  %s185_s1, 192, %s25_s20, [#allocation3]  }
  0x19   :  { %124 = dma.done.wait [#allocation5], 16  }
  0x1a   :  { %125 = vsyncadd [#allocation5], 4294967280 }
  0x1b   :  { %126 = dma.done.wait [#allocation3], 192  }
  0x1c   :  { %127 = vsyncadd [#allocation3], 4294967104 }
  0x1d   :  { %34 = sfence }
  0x1e   :  { %s36_s30 = sld [smem:[#allocation2]]  ;;  %s66_s3 = sld [smem:[#allocation2 + $0x1]]  ;;  %v35_v0 = vld [vmem:[#allocation6] ss:$2 sm:$0x3f]  ;;  %v45_v2 = vlaneseq }
  0x1f   :  { %v40_v1 = vld [vmem:[#allocation6 + $0x1] ss:$2 sm:$0x3f]  ;;  %s132_s4 = smov [#allocation7]  }
  0x20   :  { %s56_s5 = sshll.u32 %s132_s4, 4  ;;  %vm47_vm0 = vcmp.lt.s32.totalorder %v45_v2, 768  ;;  %s57_s5 = int_to_ptr.vmem [resolvable:$true] %s56_s5 }
  0x21   :  { %s102_s1 = scalar_lea.vmem %s57_s5, 96  ;;  %p107_p12 = scmp.lt.s32.totalorder %s57_s5, %s57_s5 }
  0x22   :  { %p103_p11 = scmp.ne.s32.totalorder %s57_s5, %s102_s1  ;;  %p108_p13 = scmp.lt.s32.totalorder %s102_s1, %s102_s1 }
  0x24   :  { %v37_v3 = vstv %s36_s30  ;;  %v42_v5 = vstv %s66_s3  ;;  %p109_p0 = por %p108_p13, %p107_p12 }
  0x25   :  { %v38_v4 = vmul.f32 %v37_v3, %v35_v0  ;;  %v43_v6 = vmul.f32 %v42_v5, %v40_v1 }
  0x26   :  { %p110_p1 = pnand %p109_p0, %p103_p11 }
  0x27   :  { %v44_v7 = vadd.f32 %v43_v6, %v38_v4 }
  0x29   :  { %49 = vst.msk [vmem:[#allocation7] sm:$0x3f] %vm47_vm0, %v44_v7 }
  0x2a   :  { %113 = shalt.err (!%p110_p1)
}
  0x2b   :  { %s114_s8 = scalar_lea.hbm %s186_s2, 96 }
  0x2c   :  { %p115_p2 = scmp.ne.s32.totalorder %s186_s2, %s114_s8  ;;  %p118_p3 = scmp.lt.u32.totalorder %s114_s8, %s186_s2 }
  0x2e   :  { %p120_p4 = pnand %p118_p3, %p115_p2 }
  0x30   :  { %123 = shalt.err (!%p120_p4)
}
  0x31   :  { %59 = dma.vmem_to_hbm [thread:$0]  %s57_s5, 96, %s186_s2, [#allocation4]  }
  0x32   :  { %128 = dma.done.wait [#allocation4], 96  }
  0x33   :  { %129 = vsyncadd [#allocation4], 4294967200 }
  0x34   :  { %63 = vsyncpa [#allocation3], 1 }
  0x35   :  { %64 = vsyncpa [#allocation4], 1 }
  0x36   :  { %65 = vsyncpa [#allocation5], 1 }

</bundles_post_ra>
